<compile_context>
chip_gen: v7x
topology: tpu7x:2x2x1
jax: 0.10.0
libtpu: 0.0.40
codegen_flags: <defaults>
</compile_context>

<pallas_src>
import functools

import jax
import jax.numpy as jnp
from jax.experimental import pallas as pl
from jax.experimental.pallas import tpu as pltpu


def _cross_attn_kernel(*refs, n_heads, d_kv, eps, heads_per_group, mode,
                       bias_batched, carry_kv):
    """mode in {"none", "mask", "bias"}.

    Ref layout:
      inputs : hidden(1,tq,D), kv(1,Sk,D), lnw(1,D), WqT(D,I), WkT(D,I), WvT(D,I),
               WoT(I,D), [mask(1,1,Sk) | bias_hbm(ANY)]
      outputs: out(1,tq,D)
      scratch: k(Sk,I), v(Sk,I), ctx(tq,I), [bias_buf(2,tq,Sk), bias_sem DMA(2,)]
    """
    h_ref, kv_ref, lnw_ref, wq_ref, wk_ref, wv_ref, wo_ref = refs[:7]
    rest = refs[7:]
    mask_ref = bias_hbm = None
    if mode == "mask":
        mask_ref, rest = rest[0], rest[1:]
    elif mode == "bias":
        bias_hbm, rest = rest[0], rest[1:]
    out_ref, k_scr, v_scr, ctx_scr = rest[:4]
    if mode == "bias":
        bias_buf, bias_sem = rest[4], rest[5]

    x = h_ref[0]                                   # (tq, D), activation dtype
    cdt = x.dtype
    tq = x.shape[0]
    skv = kv_ref.shape[1]
    qi = pl.program_id(1)

    # --- learned-bias streaming: per-head HBM->VMEM DMA, double-buffered ---
    if mode == "bias":
        q_start = pl.multiple_of(qi * tq, tq)
        b_idx = pl.program_id(0) if bias_batched else 0

        def bias_copy(h, slot):
            return pltpu.make_async_copy(
                bias_hbm.at[b_idx, h, pl.ds(q_start, tq), :],
                bias_buf.at[slot],
                bias_sem.at[slot])

        bias_copy(0, 0).start()    # overlap head-0 bias DMA with norm + q/k/v

    # --- T5 RMS layer norm (fp32 variance, no mean subtraction, no bias) ---
    xf = x.astype(jnp.float32)
    var = jnp.mean(xf * xf, axis=-1, keepdims=True)
    lnw = lnw_ref[...].astype(jnp.float32)                       # (1, D)
    normed = (xf * jax.lax.rsqrt(var + eps) * lnw).astype(cdt)

    # --- K/V projections: canonical [M,K]x[K,N] feeds, fp32 accumulation ---
    def project_kv():
        kv = kv_ref[0]                                           # (Sk, D)
        k_scr[...] = jnp.dot(kv, wk_ref[...],
                             preferred_element_type=jnp.float32).astype(cdt)
        v_scr[...] = jnp.dot(kv, wv_ref[...],
                             preferred_element_type=jnp.float32).astype(cdt)

    if carry_kv:
        # K/V depend only on the batch index: compute once per batch (qi == 0)
        # and carry them in VMEM scratch across the ("arbitrary") qi axis.
        @pl.when(qi == 0)
        def _():
            project_kv()
    else:
        project_kv()

    q = jnp.dot(normed, wq_ref[...],
                preferred_element_type=jnp.float32).astype(cdt)  # (tq, inner)

    if mode == "mask":
        # Hoist the fp32 cast + broadcast of the compact mask out of the head loop.
        mask_f32 = jnp.broadcast_to(mask_ref[0].astype(jnp.float32), (tq, skv))

    # --- per-head attention; contexts stored in lane-dense head groups ---
    for g0 in range(0, n_heads, heads_per_group):
        parts = []
        for h in range(g0, g0 + heads_per_group):
            sl = slice(h * d_kv, (h + 1) * d_kv)
            # T5 attention: NO 1/sqrt(d_kv) scaling.
            s = jax.lax.dot_general(q[:, sl], k_scr[:, sl],
                                    (((1,), (1,)), ((), ())),
                                    preferred_element_type=jnp.float32)   # (tq, Sk)
            if mode == "mask":
                s = s + mask_f32
            elif mode == "bias":
                slot = h & 1
                bias_copy(h, slot).wait()
                if h + 1 < n_heads:
                    bias_copy(h + 1, 1 - slot).start()   # prefetch next head's bias
                s = s + bias_buf[slot].astype(jnp.float32)
            m = jnp.max(s, axis=-1, keepdims=True)
            p = jnp.exp(s - m)
            w = p * pl.reciprocal(jnp.sum(p, axis=-1, keepdims=True))  # exact, EUP
            parts.append(jnp.dot(w.astype(cdt), v_scr[:, sl],
                                 preferred_element_type=jnp.float32).astype(cdt))
        chunk = parts[0] if len(parts) == 1 else jnp.concatenate(parts, axis=-1)
        ctx_scr[:, g0 * d_kv:(g0 + heads_per_group) * d_kv] = chunk

    # --- single output projection with K = inner, then residual add ---
    out = jnp.dot(ctx_scr[...], wo_ref[...],
                  preferred_element_type=jnp.float32)            # (tq, D)
    # Residual reuses the already-loaded fp32 activations (no h_ref re-read).
    out_ref[0] = (xf + out).astype(out_ref.dtype)


def sparse_t5_layer_cross_attention(hidden_states, key_value_states, params,
                                    attention_mask=None, position_bias=None,
                                    eps=1e-6, q_block=256):
    """Matches SparseT5LayerCrossAttention.forward (inference, dense path).

    q_block: Sq tile size (multiple of 8, must divide Sq to take effect);
    default 256 fills the 256-wide MXU and bounds live (tq, Sk) intermediates.
    NOTE: as in the torch module, attention_mask is ignored when an explicit
    position_bias is supplied (it is assumed to already include the mask).
    """
    wq, wk, wv, wo = params["wq"], params["wk"], params["wv"], params["wo"]
    lnw = params["ln_weight"]
    d_kv = params["d_kv"]

    B, Sq, D = hidden_states.shape
    Sk = key_value_states.shape[1]
    inner = wq.shape[0]
    n_heads = inner // d_kv
    dt = hidden_states.dtype

    # One-time host-side transposes: every in-kernel matmul becomes a canonical
    # [M,K]x[K,N] MXU feed. Operands stay in the activation dtype, fp32 accumulate.
    wq_t = wq.T.astype(dt)                 # (D, inner)
    wk_t = wk.T.astype(dt)
    wv_t = wv.T.astype(dt)
    wo_t = wo.T.astype(dt)                 # (inner, D)
    key_value_states = key_value_states.astype(dt)
    lnw2 = lnw.reshape(1, D)

    # --- position bias handling (torch semantics) ---
    mode, mask_arg, bias_arg = "none", None, None
    if position_bias is not None:
        returned_bias = position_bias
        mode, bias_arg = "bias", position_bias
    else:
        returned_bias = jnp.zeros((1, n_heads, Sq, Sk), dt)
        if attention_mask is not None:
            # Returned bias follows torch's promotion (zeros(dt) + fp32 mask).
            returned_bias = returned_bias + attention_mask
            am = attention_mask
            if am.ndim == 4 and am.shape[2] != 1:
                # Mask varies along the query axis: fall back to the bias path.
                mode, bias_arg = "bias", returned_bias
            else:
                # Common case: key-padding mask. Feed the kernel ONLY the compact
                # (B,1,Sk) fp32 mask -- never the (B,H,Sq,Sk) materialized bias.
                mode = "mask"
                mask_arg = jnp.broadcast_to(
                    am.astype(jnp.float32).reshape(-1, Sk)[:, None, :], (B, 1, Sk))
        # else: all-zero bias -> bias-free kernel variant.

    bias_batched = False
    if mode == "bias":
        assert bias_arg.shape[1] == n_heads and bias_arg.shape[-1] == Sk
        assert bias_arg.shape[0] in (1, B)
        bias_batched = bias_arg.shape[0] == B and B > 1

    # --- query tiling ---
    if q_block is None or q_block >= Sq or Sq % q_block != 0 or q_block % 8 != 0:
        tq, n_q = Sq, 1
    else:
        tq, n_q = q_block, Sq // q_block
    # Carry K/V across query tiles when the batch axis alone can feed both v7x
    # TensorCores; otherwise keep qi "parallel" and recompute K/V per tile.
    carry_kv = n_q > 1 and B > 1
    qi_sem = "arbitrary" if carry_kv else "parallel"

    # Lane-dense ctx stores: group ceil(128/d_kv) heads per store (>=128 lanes).
    hpg = max(1, min(n_heads, -(-128 // d_kv)))
    while n_heads % hpg:
        hpg -= 1

    # VMEM budget: ~3/4 of the chip's VMEM (~48 MiB on v7x, ~96 MiB on v5e/v6e).
    try:
        vmem_cap = pltpu.get_tpu_info().vmem_capacity_bytes
    except Exception:
        vmem_cap = 64 * 1024 * 1024        # conservative fallback (fits every gen)
    vmem_limit = min(int(vmem_cap * 3 // 4), 112 * 1024 * 1024)

    kernel = functools.partial(
        _cross_attn_kernel, n_heads=n_heads, d_kv=d_kv, eps=eps,
        heads_per_group=hpg, mode=mode, bias_batched=bias_batched,
        carry_kv=carry_kv)

    # TODO(synk): single-buffer the grid-invariant weight blocks
    # (pipeline_mode=pl.Buffered(1)) once validated on all target generations.
    in_specs = [
        pl.BlockSpec((1, tq, D), lambda b, qi: (b, qi, 0)),     # hidden_states
        pl.BlockSpec((1, Sk, D), lambda b, qi: (b, 0, 0)),      # key_value_states
        pl.BlockSpec((1, D), lambda b, qi: (0, 0)),             # layer-norm weight
        pl.BlockSpec((D, inner), lambda b, qi: (0, 0)),         # Wq^T
        pl.BlockSpec((D, inner), lambda b, qi: (0, 0)),         # Wk^T
        pl.BlockSpec((D, inner), lambda b, qi: (0, 0)),         # Wv^T
        pl.BlockSpec((inner, D), lambda b, qi: (0, 0)),         # Wo^T
    ]
    operands = [hidden_states, key_value_states, lnw2, wq_t, wk_t, wv_t, wo_t]
    scratch = [pltpu.VMEM((Sk, inner), dt),                     # K (carried)
               pltpu.VMEM((Sk, inner), dt),                     # V (carried)
               pltpu.VMEM((tq, inner), dt)]                     # per-head ctx slab
    if mode == "mask":
        in_specs.append(pl.BlockSpec((1, 1, Sk), lambda b, qi: (b, 0, 0)))
        operands.append(mask_arg)
    elif mode == "bias":
        in_specs.append(pl.BlockSpec(memory_space=pl.ANY))      # bias stays in HBM
        operands.append(bias_arg)
        scratch += [pltpu.VMEM((2, tq, Sk), bias_arg.dtype),    # per-head double buffer
                    pltpu.SemaphoreType.DMA((2,))]

    layer_output = pl.pallas_call(
        kernel,
        out_shape=jax.ShapeDtypeStruct((B, Sq, D), dt),
        grid=(B, n_q),
        in_specs=in_specs,
        out_specs=pl.BlockSpec((1, tq, D), lambda b, qi: (b, qi, 0)),
        scratch_shapes=scratch,
        compiler_params=pltpu.CompilerParams(
            dimension_semantics=("parallel", qi_sem),
            vmem_limit_bytes=vmem_limit),
    )(*operands)

    present_key_value_state = None  # use_cache=False / encoder-style call
    return (layer_output, present_key_value_state, returned_bias)


def _reference(hidden, kv, params, attention_mask=None, position_bias=None, eps=1e-6):
    """Pure-JAX reference matching the torch forward, for validation."""
    wq, wk, wv, wo = params["wq"], params["wk"], params["wv"], params["wo"]
    lnw = params["ln_weight"]
    d_kv = params["d_kv"]
    B, Sq, D = hidden.shape
    Sk = kv.shape[1]
    n_heads = wq.shape[0] // d_kv

    x = hidden.astype(jnp.float32)
    var = jnp.mean(x * x, axis=-1, keepdims=True)
    normed = x * jax.lax.rsqrt(var + eps) * lnw

    q = normed @ wq.T
    k = kv.astype(jnp.float32) @ wk.T
    v = kv.astype(jnp.float32) @ wv.T

    qh = q.reshape(B, Sq, n_heads, d_kv).transpose(0, 2, 1, 3)
    kh = k.reshape(B, Sk, n_heads, d_kv).transpose(0, 2, 1, 3)
    vh = v.reshape(B, Sk, n_heads, d_kv).transpose(0, 2, 1, 3)

    scores = jnp.einsum("bhqd,bhkd->bhqk", qh, kh)
    if position_bias is None:
        position_bias = jnp.zeros((1, n_heads, Sq, Sk), jnp.float32)
        if attention_mask is not None:
            position_bias = position_bias + attention_mask
    scores = scores + position_bias.astype(jnp.float32)
    w = jax.nn.softmax(scores, axis=-1)
    ctx = jnp.einsum("bhqk,bhkd->bhqd", w, vh)
    ctx = ctx.transpose(0, 2, 1, 3).reshape(B, Sq, n_heads * d_kv)
    return hidden + ctx @ wo.T


if __name__ == "__main__":
    # Small T5-ish config: d_model=32, num_heads=4, d_kv=8 (inner_dim=32).
    B, Sq, Sk, D, H, DKV = 2, 16, 16, 32, 4, 8
    INNER = H * DKV

    key = jax.random.PRNGKey(0)
    k_h, k_kv, k_q, k_k, k_v, k_o, k_b = jax.random.split(key, 7)

    hidden_states = jax.random.normal(k_h, (B, Sq, D), jnp.float32)
    key_value_states = jax.random.normal(k_kv, (B, Sk, D), jnp.float32)

    params = {
        "wq": jax.random.normal(k_q, (INNER, D), jnp.float32) * 0.1,
        "wk": jax.random.normal(k_k, (INNER, D), jnp.float32) * 0.1,
        "wv": jax.random.normal(k_v, (INNER, D), jnp.float32) * 0.1,
        "wo": jax.random.normal(k_o, (D, INNER), jnp.float32) * 0.1,
        "ln_weight": jnp.ones((D,), jnp.float32),
        "d_kv": DKV,
    }

    # Headroom for TPU default (bf16-pass) matmul precision in kernel vs. reference.
    tol = dict(rtol=2e-2, atol=2e-2)

    def check(name, out, ref):
        y = jax.block_until_ready(out[0])
        assert y.shape == ref.shape
        assert jnp.allclose(y, ref, **tol), \
            f"{name} mismatch, max abs diff {jnp.max(jnp.abs(y - ref))}"

    # Case 1: no mask / no bias -> bias-free fast path, full-Sq tile.
    out1 = sparse_t5_layer_cross_attention(hidden_states, key_value_states, params)
    check("no-bias", out1, _reference(hidden_states, key_value_states, params))

    # Case 2: key-padding mask + tiled queries (q_block=8):
    #         compact-mask path, K/V carried across query tiles.
    valid_len = jnp.array([12, 10])                              # per-batch valid kv length
    keep = (jnp.arange(Sk)[None, :] < valid_len[:, None]).astype(jnp.float32)
    attention_mask = ((1.0 - keep) * -1e9)[:, None, None, :]     # (B, 1, 1, Sk)
    out2 = sparse_t5_layer_cross_attention(hidden_states, key_value_states, params,
                                           attention_mask=attention_mask, q_block=8)
    check("masked", out2,
          _reference(hidden_states, key_value_states, params,
                     attention_mask=attention_mask))

    # Case 3: explicit learned position bias -> per-head HBM->VMEM bias streaming.
    position_bias = jax.random.normal(k_b, (1, H, Sq, Sk), jnp.float32) * 0.5
    out3 = sparse_t5_layer_cross_attention(hidden_states, key_value_states, params,
                                           position_bias=position_bias)
    check("bias", out3,
          _reference(hidden_states, key_value_states, params,
                     position_bias=position_bias))

    # Case 4: learned bias + tiled queries (exercises bias DMA offsets at qi > 0).
    out4 = sparse_t5_layer_cross_attention(hidden_states, key_value_states, params,
                                           position_bias=position_bias, q_block=8)
    check("bias-tiled", out4,
          _reference(hidden_states, key_value_states, params,
                     position_bias=position_bias))

    print("KERNEL_OK")
</pallas_src>

<mosaic_0001>
module attributes {stable_mosaic.version = 11 : i64} {
  func.func @_cross_attn_kernel(%arg0: i32, %arg1: i32, %arg2: memref<1x16x32xf32, #tpu.memory_space<vmem>>, %arg3: memref<1x16x32xf32, #tpu.memory_space<vmem>>, %arg4: memref<1x32xf32, #tpu.memory_space<vmem>>, %arg5: memref<32x32xf32, #tpu.memory_space<vmem>>, %arg6: memref<32x32xf32, #tpu.memory_space<vmem>>, %arg7: memref<32x32xf32, #tpu.memory_space<vmem>>, %arg8: memref<32x32xf32, #tpu.memory_space<vmem>>, %arg9: memref<1x16x32xf32, #tpu.memory_space<vmem>>, %arg10: memref<16x32xf32, #tpu.memory_space<vmem>>, %arg11: memref<16x32xf32, #tpu.memory_space<vmem>>, %arg12: memref<16x32xf32, #tpu.memory_space<vmem>>) attributes {dimension_semantics = [#tpu.dimension_semantics<parallel>, #tpu.dimension_semantics<parallel>], iteration_bounds = array<i64: 2, 1>, scalar_prefetch = 0 : i64, scratch_operands = 3 : i64, tpu.core_type = #tpu.core_type<tc>, window_params = [{transform_indices = @transform_0, window_bounds = array<i64: 1, 16, 32>}, {transform_indices = @transform_1, window_bounds = array<i64: 1, 16, 32>}, {pipeline_mode = #tpu.pipeline_mode<synchronous>, transform_indices = @transform_2, window_bounds = array<i64: 1, 32>}, {pipeline_mode = #tpu.pipeline_mode<synchronous>, transform_indices = @transform_3, window_bounds = array<i64: 32, 32>}, {pipeline_mode = #tpu.pipeline_mode<synchronous>, transform_indices = @transform_4, window_bounds = array<i64: 32, 32>}, {pipeline_mode = #tpu.pipeline_mode<synchronous>, transform_indices = @transform_5, window_bounds = array<i64: 32, 32>}, {pipeline_mode = #tpu.pipeline_mode<synchronous>, transform_indices = @transform_6, window_bounds = array<i64: 32, 32>}, {transform_indices = @transform_7, window_bounds = array<i64: 1, 16, 32>}]} {
    %c0 = arith.constant 0 : index
    %c0_0 = arith.constant 0 : index
    %c0_1 = arith.constant 0 : index
    %0 = vector.load %arg2[%c0, %c0_0, %c0_1] : memref<1x16x32xf32, #tpu.memory_space<vmem>>, vector<1x16x32xf32>
    %1 = vector.shape_cast %0 : vector<1x16x32xf32> to vector<16x32xf32>
    %2 = arith.mulf %1, %1 : vector<16x32xf32>
    %cst = arith.constant dense<0.000000e+00> : vector<16xf32>
    %3 = vector.multi_reduction <add>, %2, %cst [1] : vector<16x32xf32> to vector<16xf32>
    %4 = vector.shape_cast %3 : vector<16xf32> to vector<16x1xf32>
    %cst_2 = arith.constant 3.200000e+01 : f32
    %5 = vector.broadcast %cst_2 : f32 to vector<16x1xf32>
    %6 = arith.divf %4, %5 : vector<16x1xf32>
    %c0_3 = arith.constant 0 : index
    %c0_4 = arith.constant 0 : index
    %7 = vector.load %arg4[%c0_3, %c0_4] : memref<1x32xf32, #tpu.memory_space<vmem>>, vector<1x32xf32>
    %cst_5 = arith.constant 9.99999997E-7 : f32
    %8 = vector.broadcast %cst_5 : f32 to vector<16x1xf32>
    %9 = arith.addf %6, %8 : vector<16x1xf32>
    %10 = math.rsqrt %9 : vector<16x1xf32>
    %11 = vector.broadcast %10 : vector<16x1xf32> to vector<16x32xf32>
    %12 = arith.mulf %1, %11 : vector<16x32xf32>
    %13 = vector.broadcast %7 : vector<1x32xf32> to vector<16x32xf32>
    %14 = arith.mulf %12, %13 : vector<16x32xf32>
    %c0_6 = arith.constant 0 : index
    %c0_7 = arith.constant 0 : index
    %c0_8 = arith.constant 0 : index
    %15 = vector.load %arg3[%c0_6, %c0_7, %c0_8] : memref<1x16x32xf32, #tpu.memory_space<vmem>>, vector<1x16x32xf32>
    %16 = vector.shape_cast %15 : vector<1x16x32xf32> to vector<16x32xf32>
    %c0_9 = arith.constant 0 : index
    %c0_10 = arith.constant 0 : index
    %17 = vector.load %arg6[%c0_9, %c0_10] : memref<32x32xf32, #tpu.memory_space<vmem>>, vector<32x32xf32>
    %cst_11 = arith.constant dense<0.000000e+00> : vector<16x32xf32>
    %18 = tpu.matmul %16, %17, %cst_11 {dimension_numbers = #tpu.dot_dimension_numbers<[1], [0], [0], [1], [0, 0, 1, 1], [], []>} : vector<16x32xf32>, vector<32x32xf32>, vector<16x32xf32> -> vector<16x32xf32>
    %c0_12 = arith.constant 0 : index
    %c0_13 = arith.constant 0 : index
    %19 = vector.load %arg10[%c0_12, %c0_13] : memref<16x32xf32, #tpu.memory_space<vmem>>, vector<16x32xf32>
    tpu.vector_store %arg10[%c0_12, %c0_13], %18 {strides = array<i32>} : memref<16x32xf32, #tpu.memory_space<vmem>>, vector<16x32xf32>,
    %c0_14 = arith.constant 0 : index
    %c0_15 = arith.constant 0 : index
    %20 = vector.load %arg7[%c0_14, %c0_15] : memref<32x32xf32, #tpu.memory_space<vmem>>, vector<32x32xf32>
    %cst_16 = arith.constant dense<0.000000e+00> : vector<16x32xf32>
    %21 = tpu.matmul %16, %20, %cst_16 {dimension_numbers = #tpu.dot_dimension_numbers<[1], [0], [0], [1], [0, 0, 1, 1], [], []>} : vector<16x32xf32>, vector<32x32xf32>, vector<16x32xf32> -> vector<16x32xf32>
    %c0_17 = arith.constant 0 : index
    %c0_18 = arith.constant 0 : index
    %22 = vector.load %arg11[%c0_17, %c0_18] : memref<16x32xf32, #tpu.memory_space<vmem>>, vector<16x32xf32>
    tpu.vector_store %arg11[%c0_17, %c0_18], %21 {strides = array<i32>} : memref<16x32xf32, #tpu.memory_space<vmem>>, vector<16x32xf32>,
    %c0_19 = arith.constant 0 : index
    %c0_20 = arith.constant 0 : index
    %23 = vector.load %arg5[%c0_19, %c0_20] : memref<32x32xf32, #tpu.memory_space<vmem>>, vector<32x32xf32>
    %cst_21 = arith.constant dense<0.000000e+00> : vector<16x32xf32>
    %24 = tpu.matmul %14, %23, %cst_21 {dimension_numbers = #tpu.dot_dimension_numbers<[1], [0], [0], [1], [0, 0, 1, 1], [], []>} : vector<16x32xf32>, vector<32x32xf32>, vector<16x32xf32> -> vector<16x32xf32>
    %25 = vector.extract_strided_slice %24 {offsets = [0, 0], sizes = [16, 8], strides = [1, 1]} : vector<16x32xf32> to vector<16x8xf32>
    %c0_22 = arith.constant 0 : index
    %c0_23 = arith.constant 0 : index
    %26 = vector.load %arg10[%c0_22, %c0_23] : memref<16x32xf32, #tpu.memory_space<vmem>>, vector<16x8xf32>
    %cst_24 = arith.constant dense<0.000000e+00> : vector<16x16xf32>
    %27 = tpu.matmul %25, %26, %cst_24 {dimension_numbers = #tpu.dot_dimension_numbers<[1], [1], [0], [0], [0, 0, 1, 0], [], []>} : vector<16x8xf32>, vector<16x8xf32>, vector<16x16xf32> -> vector<16x16xf32>
    %cst_25 = arith.constant dense<0xFF800000> : vector<16xf32>
    %28 = vector.multi_reduction <maximumf>, %27, %cst_25 [1] : vector<16x16xf32> to vector<16xf32>
    %29 = vector.shape_cast %28 : vector<16xf32> to vector<16x1xf32>
    %30 = vector.broadcast %29 : vector<16x1xf32> to vector<16x16xf32>
    %31 = arith.subf %27, %30 : vector<16x16xf32>
    %32 = math.exp %31 : vector<16x16xf32>
    %cst_26 = arith.constant dense<0.000000e+00> : vector<16xf32>
    %33 = vector.multi_reduction <add>, %32, %cst_26 [1] : vector<16x16xf32> to vector<16xf32>
    %34 = vector.shape_cast %33 : vector<16xf32> to vector<16x1xf32>
    %35 = tpu.reciprocal %34 : vector<16x1xf32> -> vector<16x1xf32>
    %36 = vector.broadcast %35 : vector<16x1xf32> to vector<16x16xf32>
    %37 = arith.mulf %32, %36 : vector<16x16xf32>
    %c0_27 = arith.constant 0 : index
    %c0_28 = arith.constant 0 : index
    %38 = vector.load %arg11[%c0_27, %c0_28] : memref<16x32xf32, #tpu.memory_space<vmem>>, vector<16x8xf32>
    %cst_29 = arith.constant dense<0.000000e+00> : vector<16x8xf32>
    %39 = tpu.matmul %37, %38, %cst_29 {dimension_numbers = #tpu.dot_dimension_numbers<[1], [0], [0], [1], [0, 0, 1, 1], [], []>} : vector<16x16xf32>, vector<16x8xf32>, vector<16x8xf32> -> vector<16x8xf32>
    %40 = vector.extract_strided_slice %24 {offsets = [0, 8], sizes = [16, 8], strides = [1, 1]} : vector<16x32xf32> to vector<16x8xf32>
    %c0_30 = arith.constant 0 : index
    %c8 = arith.constant 8 : index
    %41 = vector.load %arg10[%c0_30, %c8] : memref<16x32xf32, #tpu.memory_space<vmem>>, vector<16x8xf32>
    %cst_31 = arith.constant dense<0.000000e+00> : vector<16x16xf32>
    %42 = tpu.matmul %40, %41, %cst_31 {dimension_numbers = #tpu.dot_dimension_numbers<[1], [1], [0], [0], [0, 0, 1, 0], [], []>} : vector<16x8xf32>, vector<16x8xf32>, vector<16x16xf32> -> vector<16x16xf32>
    %cst_32 = arith.constant dense<0xFF800000> : vector<16xf32>
    %43 = vector.multi_reduction <maximumf>, %42, %cst_32 [1] : vector<16x16xf32> to vector<16xf32>
    %44 = vector.shape_cast %43 : vector<16xf32> to vector<16x1xf32>
    %45 = vector.broadcast %44 : vector<16x1xf32> to vector<16x16xf32>
    %46 = arith.subf %42, %45 : vector<16x16xf32>
    %47 = math.exp %46 : vector<16x16xf32>
    %cst_33 = arith.constant dense<0.000000e+00> : vector<16xf32>
    %48 = vector.multi_reduction <add>, %47, %cst_33 [1] : vector<16x16xf32> to vector<16xf32>
    %49 = vector.shape_cast %48 : vector<16xf32> to vector<16x1xf32>
    %50 = tpu.reciprocal %49 : vector<16x1xf32> -> vector<16x1xf32>
    %51 = vector.broadcast %50 : vector<16x1xf32> to vector<16x16xf32>
    %52 = arith.mulf %47, %51 : vector<16x16xf32>
    %c0_34 = arith.constant 0 : index
    %c8_35 = arith.constant 8 : index
    %53 = vector.load %arg11[%c0_34, %c8_35] : memref<16x32xf32, #tpu.memory_space<vmem>>, vector<16x8xf32>
    %cst_36 = arith.constant dense<0.000000e+00> : vector<16x8xf32>
    %54 = tpu.matmul %52, %53, %cst_36 {dimension_numbers = #tpu.dot_dimension_numbers<[1], [0], [0], [1], [0, 0, 1, 1], [], []>} : vector<16x16xf32>, vector<16x8xf32>, vector<16x8xf32> -> vector<16x8xf32>
    %55 = vector.extract_strided_slice %24 {offsets = [0, 16], sizes = [16, 8], strides = [1, 1]} : vector<16x32xf32> to vector<16x8xf32>
    %c0_37 = arith.constant 0 : index
    %c16 = arith.constant 16 : index
    %56 = vector.load %arg10[%c0_37, %c16] : memref<16x32xf32, #tpu.memory_space<vmem>>, vector<16x8xf32>
    %cst_38 = arith.constant dense<0.000000e+00> : vector<16x16xf32>
    %57 = tpu.matmul %55, %56, %cst_38 {dimension_numbers = #tpu.dot_dimension_numbers<[1], [1], [0], [0], [0, 0, 1, 0], [], []>} : vector<16x8xf32>, vector<16x8xf32>, vector<16x16xf32> -> vector<16x16xf32>
    %cst_39 = arith.constant dense<0xFF800000> : vector<16xf32>
    %58 = vector.multi_reduction <maximumf>, %57, %cst_39 [1] : vector<16x16xf32> to vector<16xf32>
    %59 = vector.shape_cast %58 : vector<16xf32> to vector<16x1xf32>
    %60 = vector.broadcast %59 : vector<16x1xf32> to vector<16x16xf32>
    %61 = arith.subf %57, %60 : vector<16x16xf32>
    %62 = math.exp %61 : vector<16x16xf32>
    %cst_40 = arith.constant dense<0.000000e+00> : vector<16xf32>
    %63 = vector.multi_reduction <add>, %62, %cst_40 [1] : vector<16x16xf32> to vector<16xf32>
    %64 = vector.shape_cast %63 : vector<16xf32> to vector<16x1xf32>
    %65 = tpu.reciprocal %64 : vector<16x1xf32> -> vector<16x1xf32>
    %66 = vector.broadcast %65 : vector<16x1xf32> to vector<16x16xf32>
    %67 = arith.mulf %62, %66 : vector<16x16xf32>
    %c0_41 = arith.constant 0 : index
    %c16_42 = arith.constant 16 : index
    %68 = vector.load %arg11[%c0_41, %c16_42] : memref<16x32xf32, #tpu.memory_space<vmem>>, vector<16x8xf32>
    %cst_43 = arith.constant dense<0.000000e+00> : vector<16x8xf32>
    %69 = tpu.matmul %67, %68, %cst_43 {dimension_numbers = #tpu.dot_dimension_numbers<[1], [0], [0], [1], [0, 0, 1, 1], [], []>} : vector<16x16xf32>, vector<16x8xf32>, vector<16x8xf32> -> vector<16x8xf32>
    %70 = vector.extract_strided_slice %24 {offsets = [0, 24], sizes = [16, 8], strides = [1, 1]} : vector<16x32xf32> to vector<16x8xf32>
    %c0_44 = arith.constant 0 : index
    %c24 = arith.constant 24 : index
    %71 = vector.load %arg10[%c0_44, %c24] : memref<16x32xf32, #tpu.memory_space<vmem>>, vector<16x8xf32>
    %cst_45 = arith.constant dense<0.000000e+00> : vector<16x16xf32>
    %72 = tpu.matmul %70, %71, %cst_45 {dimension_numbers = #tpu.dot_dimension_numbers<[1], [1], [0], [0], [0, 0, 1, 0], [], []>} : vector<16x8xf32>, vector<16x8xf32>, vector<16x16xf32> -> vector<16x16xf32>
    %cst_46 = arith.constant dense<0xFF800000> : vector<16xf32>
    %73 = vector.multi_reduction <maximumf>, %72, %cst_46 [1] : vector<16x16xf32> to vector<16xf32>
    %74 = vector.shape_cast %73 : vector<16xf32> to vector<16x1xf32>
    %75 = vector.broadcast %74 : vector<16x1xf32> to vector<16x16xf32>
    %76 = arith.subf %72, %75 : vector<16x16xf32>
    %77 = math.exp %76 : vector<16x16xf32>
    %cst_47 = arith.constant dense<0.000000e+00> : vector<16xf32>
    %78 = vector.multi_reduction <add>, %77, %cst_47 [1] : vector<16x16xf32> to vector<16xf32>
    %79 = vector.shape_cast %78 : vector<16xf32> to vector<16x1xf32>
    %80 = tpu.reciprocal %79 : vector<16x1xf32> -> vector<16x1xf32>
    %81 = vector.broadcast %80 : vector<16x1xf32> to vector<16x16xf32>
    %82 = arith.mulf %77, %81 : vector<16x16xf32>
    %c0_48 = arith.constant 0 : index
    %c24_49 = arith.constant 24 : index
    %83 = vector.load %arg11[%c0_48, %c24_49] : memref<16x32xf32, #tpu.memory_space<vmem>>, vector<16x8xf32>
    %cst_50 = arith.constant dense<0.000000e+00> : vector<16x8xf32>
    %84 = tpu.matmul %82, %83, %cst_50 {dimension_numbers = #tpu.dot_dimension_numbers<[1], [0], [0], [1], [0, 0, 1, 1], [], []>} : vector<16x16xf32>, vector<16x8xf32>, vector<16x8xf32> -> vector<16x8xf32>
    %85 = tpu.concatenate %39, %54, %69, %84 in 1 : vector<16x8xf32>, vector<16x8xf32>, vector<16x8xf32>, vector<16x8xf32> -> vector<16x32xf32>
    %c0_51 = arith.constant 0 : index
    %c0_52 = arith.constant 0 : index
    %86 = vector.load %arg12[%c0_51, %c0_52] : memref<16x32xf32, #tpu.memory_space<vmem>>, vector<16x32xf32>
    tpu.vector_store %arg12[%c0_51, %c0_52], %85 {strides = array<i32>} : memref<16x32xf32, #tpu.memory_space<vmem>>, vector<16x32xf32>,
    %c0_53 = arith.constant 0 : index
    %c0_54 = arith.constant 0 : index
    %87 = vector.load %arg12[%c0_53, %c0_54] : memref<16x32xf32, #tpu.memory_space<vmem>>, vector<16x32xf32>
    %c0_55 = arith.constant 0 : index
    %c0_56 = arith.constant 0 : index
    %88 = vector.load %arg8[%c0_55, %c0_56] : memref<32x32xf32, #tpu.memory_space<vmem>>, vector<32x32xf32>
    %cst_57 = arith.constant dense<0.000000e+00> : vector<16x32xf32>
    %89 = tpu.matmul %87, %88, %cst_57 {dimension_numbers = #tpu.dot_dimension_numbers<[1], [0], [0], [1], [0, 0, 1, 1], [], []>} : vector<16x32xf32>, vector<32x32xf32>, vector<16x32xf32> -> vector<16x32xf32>
    %90 = arith.addf %1, %89 : vector<16x32xf32>
    %c0_58 = arith.constant 0 : index
    %c0_59 = arith.constant 0 : index
    %c0_60 = arith.constant 0 : index
    %91 = vector.load %arg9[%c0_58, %c0_59, %c0_60] : memref<1x16x32xf32, #tpu.memory_space<vmem>>, vector<1x16x32xf32>
    %92 = vector.shape_cast %91 : vector<1x16x32xf32> to vector<16x32xf32>
    %93 = vector.shape_cast %90 : vector<16x32xf32> to vector<1x16x32xf32>
    tpu.vector_store %arg9[%c0_58, %c0_59, %c0_60], %93 {strides = array<i32>} : memref<1x16x32xf32, #tpu.memory_space<vmem>>, vector<1x16x32xf32>,
    return
  }
  func.func @transform_0(%arg0: i32, %arg1: i32) -> (i32, i32, i32) {
    %c0_i32 = arith.constant 0 : i32
    %c0_i32_0 = arith.constant 0 : i32
    return %arg0, %arg1, %c0_i32 : i32, i32, i32
  }
  func.func @transform_1(%arg0: i32, %arg1: i32) -> (i32, i32, i32) {
    %c0_i32 = arith.constant 0 : i32
    %c0_i32_0 = arith.constant 0 : i32
    %c0_i32_1 = arith.constant 0 : i32
    return %arg0, %c0_i32, %c0_i32_0 : i32, i32, i32
  }
  func.func @transform_2(%arg0: i32, %arg1: i32) -> (i32, i32) {
    %c0_i32 = arith.constant 0 : i32
    %c0_i32_0 = arith.constant 0 : i32
    %c0_i32_1 = arith.constant 0 : i32
    return %c0_i32, %c0_i32_0 : i32, i32
  }
  func.func @transform_3(%arg0: i32, %arg1: i32) -> (i32, i32) {
    %c0_i32 = arith.constant 0 : i32
    %c0_i32_0 = arith.constant 0 : i32
    %c0_i32_1 = arith.constant 0 : i32
    return %c0_i32, %c0_i32_0 : i32, i32
  }
  func.func @transform_4(%arg0: i32, %arg1: i32) -> (i32, i32) {
    %c0_i32 = arith.constant 0 : i32
    %c0_i32_0 = arith.constant 0 : i32
    %c0_i32_1 = arith.constant 0 : i32
    return %c0_i32, %c0_i32_0 : i32, i32
  }
  func.func @transform_5(%arg0: i32, %arg1: i32) -> (i32, i32) {
    %c0_i32 = arith.constant 0 : i32
    %c0_i32_0 = arith.constant 0 : i32
    %c0_i32_1 = arith.constant 0 : i32
    return %c0_i32, %c0_i32_0 : i32, i32
  }
  func.func @transform_6(%arg0: i32, %arg1: i32) -> (i32, i32) {
    %c0_i32 = arith.constant 0 : i32
    %c0_i32_0 = arith.constant 0 : i32
    %c0_i32_1 = arith.constant 0 : i32
    return %c0_i32, %c0_i32_0 : i32, i32
  }
  func.func @transform_7(%arg0: i32, %arg1: i32) -> (i32, i32, i32) {
    %c0_i32 = arith.constant 0 : i32
    %c0_i32_0 = arith.constant 0 : i32
    return %arg0, %arg1, %c0_i32 : i32, i32, i32
  }
}

</mosaic_0001>

<bundles_post_ra>
// kernel: tpu_custom_call.1
= control target key start
LH: loop header
LB: loop body
LE: loop exit
PB: predicated region body
PF: predicated region fallthrough
CT: control target
= control target key end

     0   :  { %s3088_s0 = inlined_call_operand.hbm [shape: f32[2,16,32], index: 0, kind: input, shape index: {}]   ;;  %s3089_s1 = inlined_call_operand.hbm [shape: f32[2,16,32], index: 1, kind: input, shape index: {}]   ;;  %s3090_s2 = inlined_call_operand.vmem [shape: f32[1,32], index: 2, kind: input, shape index: {}]   ;;  %s3091_s3 = inlined_call_operand.hbm [shape: f32[32,32], index: 3, kind: input, shape index: {}]   ;;  %s3092_s4 = inlined_call_operand.hbm [shape: f32[32,32], index: 4, kind: input, shape index: {}]   ;;  %s3093_s5 = inlined_call_operand.hbm [shape: f32[32,32], index: 5, kind: input, shape index: {}]   ;;  %s3094_s6 = inlined_call_operand.hbm [shape: f32[32,32], index: 6, kind: input, shape index: {}]   ;;  %s3095_s7 = inlined_call_operand.hbm [shape: f32[2,16,32], index: 7, kind: output, shape index: {}]  }
   0x1   :  { %3106 = sst [smem:[#allocation25_spill]] %s3088_s0 }
   0x2   :  { %3107 = sst [smem:[#allocation26_spill]] %s3091_s3 }
   0x3   :  { %3108 = sst [smem:[#allocation27_spill]] %s3092_s4 }
   0x4   :  { %3109 = sst [smem:[#allocation28_spill]] %s3093_s5 }
   0x5   :  { %3110 = sst [smem:[#allocation29_spill]] %s3094_s6 }
   0x6   :  { %3111 = sst [smem:[#allocation30_spill]] %s3095_s7 }
   0x7   :  { %12 = vsyncpa [#allocation6], 0 }
   0x8   :  { %14 = vsyncpa [#allocation6 + $0x1], 0 }
   0x9   :  { %15 = vsyncpa [#allocation9], 0 }
   0xa   :  { %17 = vsyncpa [#allocation9 + $0x1], 0 }
   0xb   :  { %18 = vsyncpa [#allocation12], 0 }
   0xc   :  { %19 = vsyncpa [#allocation15], 0 }
   0xd   :  { %20 = vsyncpa [#allocation7], 0 }
   0xe   :  { %22 = vsyncpa [#allocation7 + $0x1], 0  ;;  %s2587_s24 = smov 0   ;;  %s2589_s25 = smov 0  }
   0xf   :  { %s2591_s26 = smov 0   ;;  %s2593_s27 = smov 0  }
  0x10   :  { %s2595_s28 = smov 0   ;;  %s2597_s29 = smov 0  }
  0x11 LB: > { %3112 = sst [smem:[#allocation23_spill]] %s2509_s24  ;;  %s2618_s30 = sadd.s32 4294967295, %s2529_s29   ;;  %s2529_s29 = sphi %s2597_s29, %s28_s29   ;;  %s2525_s28 = sphi %s2595_s28, %s3148_s28   ;;  %s2521_s27 = sphi %s2593_s27, %s3147_s27   ;;  %s2517_s26 = sphi %s2591_s26, %s3146_s26   ;;  %s2513_s25 = sphi %s2589_s25, %s3145_s25   ;;  %s2509_s24 = sphi %s2587_s24, %s3144_s24  }
  0x12   : > { %s1786_s8 = sadd.s32 4294967294, %s2529_s29   ;;  %p62_p0 = scmp.ne.s32.totalorder %s2513_s25, %s2509_s24 }
  0x13   : > { %p3096_p1 = scmp.eq.s32.totalorder %s2618_s30, 0  ;;  %p225_p3 = scmp.eq.s32.totalorder %s1786_s8, 1 }
  0x14   : > { %p1787_p5 = scmp.ge.s32.totalorder %s2529_s29, 1  ;;  %p232_p7 = scmp.lt.s32.totalorder %s2529_s29, 3 }
  0x15   : > { %p2627_p4 = por %p3096_p1, %p62_p0  ;;  %p2632_p6 = por %p225_p3, %p62_p0 }
  0x16   : > { %p2637_p8 = pnand %p1787_p5, %p232_p7  ;;  %s2531_s12 = smov [#allocation10]  }
  0x17   : > { %s3113_s9 = scalar_select %p2627_p4, 1, 0 }
  0x18   : > { %s3114_s10 = scalar_select %p2632_p6, 1, 0 }
  0x19   : > { %s3116_s11 = scalar_select %p2637_p8, 1, 0 }
  0x1a   : > { %3115 = sst [smem:[#allocation24_spill]] %s3114_s10  ;;  %s247_s13 = sshll.u32 %s2531_s12, 4  ;;  %s2641_s13 = int_to_ptr.vmem [resolvable:$true] %s247_s13 }
  0x1b   : > { %p2098_p9 = pneg %p2637_p8  ;;  %s2532_s15 = smov [#allocation11]  }
  0x1c   : > { %s260_s16 = sshll.u32 %s2532_s15, 4  ;;  %s2533_s17 = smov [#allocation13]   ;;  %s2652_s16 = int_to_ptr.vmem [resolvable:$true] %s260_s16 }
  0x1d   : > { %p2648_p11 = pnand %p2098_p9, %p3096_p1  ;;  %s2654_s18 = sshll.u32 %s2533_s17, 4  ;;  %s274_s18 = int_to_ptr.vmem [resolvable:$true] %s2654_s18 }
  0x1e   : > { %s3118_s3 = sld [smem:[#allocation26_spill]] }
  0x1f   : > { %p2664_p13 = pneg %p2648_p11 }
  0x24   : > { %s2259_s21 = scalar_lea.hbm %s3118_s3, 512 }
  0x25   : > { %p2260_p12 = scmp.ne.s32.totalorder %s3118_s3, %s2259_s21  ;;  %p2266_p5 = scmp.lt.u32.totalorder %s2259_s21, %s3118_s3 }
  0x27   : > { %p2262_p0 = pnand %p2664_p13, %p2260_p12 }
  0x29   : > { %p2263_p3 = pneg %p2262_p0 }
  0x2b   : > { %p2268_p7 = pnand %p2266_p5, %p2263_p3 }
  0x2d   : > { %2271 = shalt.err (!%p2268_p7)
}
  0x2e   : > { %s2272_s17 = scalar_lea.vmem %s2641_s13, 512  ;;  %p2280_p2 = scmp.lt.s32.totalorder %s2641_s13, %s2641_s13 }
  0x2f   : > { %p2273_p9 = scmp.ne.s32.totalorder %s2641_s13, %s2272_s17  ;;  %p2281_p6 = scmp.lt.s32.totalorder %s2272_s17, %s2272_s17 }
  0x31   : > { %p2275_p10 = pnand %p2273_p9, %p2664_p13  ;;  %p2282_p12 = por %p2281_p6, %p2280_p2 }
  0x33   : > { %p2276_p1 = pneg %p2275_p10 }
  0x35   : > { %p2283_p0 = pnand %p2282_p12, %p2276_p1 }
  0x37   : > { %2286 = shalt.err (!%p2283_p0)
}
  0x38   : > { %s3102_s19 = smov 128   ;;  %s3104_s20 = smov 8  }
  0x39   : > { %2101 = dma.hbm_to_vmem [thread:$0]  (!%p2648_p11), %s3118_s3, 512, %s2641_s13, [#allocation9], %s3102_s19, %s3102_s19, %s3104_s20  }
  0x3a   : > { %s3120_s4 = sld [smem:[#allocation27_spill]] }
  0x40   : > { %s2287_s15 = scalar_lea.hbm %s3120_s4, 512 }
  0x41   : > { %p2288_p1 = scmp.ne.s32.totalorder %s3120_s4, %s2287_s15  ;;  %p2294_p10 = scmp.lt.u32.totalorder %s2287_s15, %s3120_s4 }
  0x43   : > { %p2290_p2 = pnand %p2288_p1, %p2664_p13 }
  0x45   : > { %p2291_p6 = pneg %p2290_p2 }
  0x47   : > { %p2296_p3 = pnand %p2294_p10, %p2291_p6 }
  0x49   : > { %2299 = shalt.err (!%p2296_p3)
}
  0x4a   : > { %s2300_s13 = scalar_lea.vmem %s2652_s16, 512  ;;  %p2308_p12 = scmp.lt.s32.totalorder %s2652_s16, %s2652_s16 }
  0x4b   : > { %p2301_p5 = scmp.ne.s32.totalorder %s2652_s16, %s2300_s13  ;;  %p2309_p0 = scmp.lt.s32.totalorder %s2300_s13, %s2300_s13 }
  0x4d   : > { %p2303_p7 = pnand %p2301_p5, %p2664_p13  ;;  %p2310_p1 = por %p2309_p0, %p2308_p12 }
  0x4f   : > { %p2304_p9 = pneg %p2303_p7 }
  0x51   : > { %p2311_p2 = pnand %p2310_p1, %p2304_p9 }
  0x53   : > { %2314 = shalt.err (!%p2311_p2)
}
  0x54   : > { %2104 = dma.hbm_to_vmem [thread:$0]  (!%p2648_p11), %s3120_s4, 512, %s2652_s16, [#allocation12], %s3102_s19, %s3102_s19, %s3104_s20  }
  0x55   : > { %s3121_s5 = sld [smem:[#allocation28_spill]] }
  0x5b   : > { %s2315_s22 = scalar_lea.hbm %s3121_s5, 512 }
  0x5c   : > { %p2316_p6 = scmp.ne.s32.totalorder %s3121_s5, %s2315_s22  ;;  %p2322_p5 = scmp.lt.u32.totalorder %s2315_s22, %s3121_s5 }
  0x5e   : > { %p2318_p10 = pnand %p2316_p6, %p2664_p13 }
  0x60   : > { %p2319_p3 = pneg %p2318_p10 }
  0x62   : > { %p2324_p7 = pnand %p2322_p5, %p2319_p3 }
  0x64   : > { %2327 = shalt.err (!%p2324_p7)
}
  0x65   : > { %s2328_s13 = scalar_lea.vmem %s274_s18, 512  ;;  %p2336_p1 = scmp.lt.s32.totalorder %s274_s18, %s274_s18 }
  0x66   : > { %p2329_p9 = scmp.ne.s32.totalorder %s274_s18, %s2328_s13  ;;  %p2337_p2 = scmp.lt.s32.totalorder %s2328_s13, %s2328_s13 }
  0x68   : > { %p2331_p12 = pnand %p2329_p9, %p2664_p13  ;;  %p2338_p4 = por %p2337_p2, %p2336_p1 }
  0x6a   : > { %p2332_p0 = pneg %p2331_p12 }
  0x6c   : > { %p2339_p8 = pnand %p2338_p4, %p2332_p0 }
  0x6e   : > { %2342 = shalt.err (!%p2339_p8)
}
  0x6f   : > { %2107 = dma.hbm_to_vmem [thread:$0]  (!%p2648_p11), %s3121_s5, 512, %s274_s18, [#allocation12], %s3102_s19, %s3102_s19, %s3104_s20  }
  0x70   : > { %s2536_s24 = smov [#allocation14]   ;;  %s3122_s6 = sld [smem:[#allocation29_spill]] }
  0x71   : > { %s286_s10 = sshll.u32 %s2536_s24, 4  ;;  %s287_s10 = int_to_ptr.vmem [resolvable:$true] %s286_s10 }
  0x76   : > { %s2343_s23 = scalar_lea.hbm %s3122_s6, 512 }
  0x77   : > { %p2344_p4 = scmp.ne.s32.totalorder %s3122_s6, %s2343_s23  ;;  %p2350_p10 = scmp.lt.u32.totalorder %s2343_s23, %s3122_s6 }
  0x79   : > { %p2346_p8 = pnand %p2344_p4, %p2664_p13 }
  0x7b   : > { %p2347_p6 = pneg %p2346_p8 }
  0x7d   : > { %p2352_p3 = pnand %p2350_p10, %p2347_p6 }
  0x7f   : > { %2355 = shalt.err (!%p2352_p3)
}
  0x80   : > { %s2356_s18 = scalar_lea.vmem %s287_s10, 512  ;;  %p2364_p12 = scmp.lt.s32.totalorder %s287_s10, %s287_s10 }
  0x81   : > { %p2357_p5 = scmp.ne.s32.totalorder %s287_s10, %s2356_s18  ;;  %p2365_p0 = scmp.lt.s32.totalorder %s2356_s18, %s2356_s18 }
  0x83   : > { %p2359_p7 = pnand %p2357_p5, %p2664_p13  ;;  %p2366_p1 = por %p2365_p0, %p2364_p12 }
  0x85   : > { %p2360_p9 = pneg %p2359_p7 }
  0x87   : > { %p2367_p2 = pnand %p2366_p1, %p2360_p9 }
  0x89   : > { %2370 = shalt.err (!%p2367_p2)
}
  0x8a   : > { %2110 = dma.hbm_to_vmem [thread:$0]  (!%p2648_p11), %s3122_s6, 512, %s287_s10, [#allocation15], %s3102_s19, %s3102_s19, %s3104_s20  }
  0x8b   : > { %s40_s8 = sadd.s32 1, %s2525_s28  ;;  %s49_s14 = sadd.s32 1, %s2517_s26 }
  0x8c   : > { %p42_p13 = scmp.ge.s32.totalorder %s40_s8, 2  ;;  %p56_p4 = scmp.ne.s32.totalorder %s2517_s26, %s2513_s25 }
  0x8d   : > { %p57_p8 = scmp.eq.s32.totalorder %s2529_s29, 0  ;;  %p2126_p6 = scmp.lt.s32.totalorder %s2529_s29, 2 }
  0x8e   : > { %s3150_s8 = smov (%p42_p13, %s40_s8), 0  ;;  %p3123_p3 = scmp.eq.s32.totalorder %s2618_s30, 1 }
  0x8f   : > { %p58_p10 = por %p57_p8, %p56_p4  ;;  %s44_s21 = ssub.s32 %s2525_s28, %s3150_s8 }
  0x90   : > { %p2767_p5 = por %p3123_p3, %p56_p4  ;;  %s300_s22 = sand.u32 1, %s2517_s26  }
  0x91   : > { %p47_p7 = scmp.eq.s32.totalorder %s44_s21, 0  ;;  %s2774_s10 = sshll.u32 %s300_s22, 4 }
  0x92   : > { %s1845_s23 = sshll.u32 %s2525_s28, 8  ;;  %s3125_s0 = sld [smem:[#allocation25_spill]] }
  0x93   : > { %s2778_s12 = scalar_select %p47_p7, %s2517_s26, %s49_s14  }
  0x94   : > { %s304_s18 = scalar_lea.vmem [#allocation5], %s2774_s10  ;;  %p2788_p11 = pnand %p2126_p6, %p58_p10 }
  0x95   : > { %s313_s16 = sshll.u32 %s304_s18, 4  ;;  %s2797_s15 = scalar_lea.hbm %s3089_s1, %s1845_s23  ;;  %s2792_s16 = int_to_ptr.vmem [resolvable:$true] %s313_s16 }
  0x96   : > { %s2799_s17 = scalar_lea.sflag [#allocation6], %s300_s22  ;;  %p2373_p12 = pneg %p2788_p11 }
  0x98   : > { %s2783_s13 = scalar_lea.hbm %s3125_s0, %s1845_s23  ;;  %s2376_s3 = scalar_lea.hbm %s3125_s0, 512 }
  0x99   : > { %s2371_s19 = scalar_lea.hbm %s2783_s13, 256  ;;  %p2377_p2 = scmp.lt.u32.totalorder %s2783_s13, %s3125_s0 }
  0x9a   : > { %p2372_p9 = scmp.ne.s32.totalorder %s2783_s13, %s2371_s19  ;;  %p2378_p13 = scmp.lt.u32.totalorder %s2376_s3, %s2371_s19 }
  0x9b   : > { %p2380_p8 = scmp.lt.u32.totalorder %s2371_s19, %s2783_s13 }
  0x9c   : > { %p2374_p0 = pnand %p2373_p12, %p2372_p9  ;;  %p2379_p4 = por %p2378_p13, %p2377_p2 }
  0x9e   : > { %p2375_p1 = pneg %p2374_p0  ;;  %p2381_p6 = por %p2380_p8, %p2379_p4 }
  0xa0   : > { %p2382_p10 = pnand %p2381_p6, %p2375_p1 }
  0xa2   : > { %2385 = shalt.err (!%p2382_p10)
}
  0xa3   : > { %s2386_s22 = scalar_lea.vmem %s2792_s16, 256  ;;  %s2537_s20 = smov [#allocation5]  }
  0xa4   : > { %p2387_p3 = scmp.ne.s32.totalorder %s2792_s16, %s2386_s22  ;;  %s2391_s23 = sshll.u32 %s2537_s20, 4  ;;  %s2392_s23 = int_to_ptr.vmem [resolvable:$false] %s2391_s23 }
  0xa5   : > { %s2393_s4 = scalar_lea.vmem %s2392_s23, 512  ;;  %p2394_p0 = scmp.lt.s32.totalorder %s2792_s16, %s2392_s23 }
  0xa6   : > { %p2389_p7 = pnand %p2387_p3, %p2373_p12  ;;  %p2395_p2 = scmp.lt.s32.totalorder %s2393_s4, %s2386_s22 }
  0xa8   : > { %p2390_p9 = pneg %p2389_p7  ;;  %p2396_p13 = por %p2395_p2, %p2394_p0 }
  0xaa   : > { %p2397_p4 = pnand %p2396_p13, %p2390_p9 }
  0xac   : > { %2400 = shalt.err (!%p2397_p4)
}
  0xad   : > { %s3127_s3 = smov 8   ;;  %s3128_s5 = smov 128  }
  0xae   : > { %2114 = dma.hbm_to_vmem [thread:$0]  (!%p2788_p11), %s2783_s13, 256, %s2792_s16, %s2799_s17, %s3128_s5, %s3128_s5, %s3127_s3  }
  0xaf   : > { %s327_s19 = scalar_lea.vmem [#allocation8], %s2774_s10  ;;  %s323_s21 = sand.u32 1, %s2529_s29  }
  0xb0   : > { %s334_s14 = sshll.u32 %s327_s19, 4  ;;  %s2834_s18 = scalar_lea.sflag [#allocation9], %s323_s21  ;;  %s2832_s14 = int_to_ptr.vmem [resolvable:$true] %s334_s14 }
  0xb1   : > { %s2401_s22 = scalar_lea.hbm %s2797_s15, 256  ;;  %s2406_s4 = scalar_lea.hbm %s3089_s1, 512 }
  0xb2   : > { %p2402_p1 = scmp.ne.s32.totalorder %s2797_s15, %s2401_s22  ;;  %p2407_p10 = scmp.lt.u32.totalorder %s2797_s15, %s3089_s1 }
  0xb3   : > { %p2408_p3 = scmp.lt.u32.totalorder %s2406_s4, %s2401_s22  ;;  %p2410_p9 = scmp.lt.u32.totalorder %s2401_s22, %s2797_s15 }
  0xb4   : > { %p2404_p8 = pnand %p2402_p1, %p2373_p12 }
  0xb5   : > { %p2409_p7 = por %p2408_p3, %p2407_p10 }
  0xb6   : > { %p2405_p6 = pneg %p2404_p8 }
  0xb7   : > { %p2411_p0 = por %p2410_p9, %p2409_p7 }
  0xb9   : > { %p2412_p2 = pnand %p2411_p0, %p2405_p6 }
  0xbb   : > { %2415 = shalt.err (!%p2412_p2)
}
  0xbc   : > { %s2416_s10 = scalar_lea.vmem %s2832_s14, 256  ;;  %s2538_s13 = smov [#allocation8]  }
  0xbd   : > { %p2417_p13 = scmp.ne.s32.totalorder %s2832_s14, %s2416_s10  ;;  %s2421_s16 = sshll.u32 %s2538_s13, 4  ;;  %s2422_s16 = int_to_ptr.vmem [resolvable:$false] %s2421_s16 }
  0xbe   : > { %s2423_s0 = scalar_lea.vmem %s2422_s16, 512  ;;  %p2424_p8 = scmp.lt.s32.totalorder %s2832_s14, %s2422_s16 }
  0xbf   : > { %p2419_p4 = pnand %p2417_p13, %p2373_p12  ;;  %p2425_p10 = scmp.lt.s32.totalorder %s2423_s0, %s2416_s10 }
  0xc1   : > { %p2420_p1 = pneg %p2419_p4  ;;  %p2426_p3 = por %p2425_p10, %p2424_p8 }
  0xc3   : > { %p2427_p7 = pnand %p2426_p3, %p2420_p1 }
  0xc5   : > { %2430 = shalt.err (!%p2427_p7)
}
  0xc6   : > { %2117 = dma.hbm_to_vmem [thread:$0]  (!%p2788_p11), %s2797_s15, 256, %s2832_s14, %s2834_s18, %s3128_s5, %s3128_s5, %s3127_s3  }
  0xc7   : > { %p3129_p12 = scmp.ne.s32.totalorder %s3116_s11, 0 }
  0xc8   : > { %s2866_s6 = sand.u32 (!%p3129_p12), 1, %s2513_s25   ;;  %p3130_p6 = scmp.ne.s32.totalorder (!%p3129_p12), %s3113_s9, 0 }
  0xc9   : > { %346 = sbr.rel (%p3129_p12) target bundleno = 3321 (0xcf9), region = 48  ;;  %s2869_s17 = sshll.u32 (!%p3129_p12), %s2866_s6, 4 }
  0xca   : > { %s349_s7 = scalar_lea.sflag (!%p3129_p12), [#allocation6], %s2866_s6  ;;  %s352_s19 = scalar_lea.vmem (!%p3129_p12), [#allocation5], %s2869_s17 }
  0xd0   : > { %2484 = dma.done.wait (%p3130_p6), %s349_s7, 256  }
  0xd1   : > { %2486 = vsyncadd (%p3130_p6), %s349_s7, 4294967040  ;;  %s357_s11 = sand.u32 1, %s2618_s30   ;;  %s361_s3 = scalar_lea.vmem [#allocation8], %s2869_s17 }
  0xd2   : > { %s358_s15 = scalar_lea.sflag [#allocation9], %s357_s11 }
  0xd3   : > { %2488 = dma.done.wait (%p3130_p6), %s358_s15, 256  }
  0xd4   : > { %2490 = vsyncadd (%p3130_p6), %s358_s15, 4294967040  ;;  %p3131_p11 = scmp.eq.s32.totalorder %s2618_s30, 0 }
  0xd6   : > { %2492 = dma.done.wait (%p3131_p11), [#allocation9], 512   ;;  %p3132_p9 = pmov %p3131_p11 }
  0xd8   : > { %2494 = vsyncadd (%p3132_p9), [#allocation9], 4294966784  ;;  %p3133_p0 = pmov %p3132_p9 }
  0xda   : > { %2496 = dma.done.wait (%p3133_p0), [#allocation12], 1024   ;;  %p3134_p2 = pmov %p3133_p0 }
  0xdb   : > { %p3135_p13 = pmov %p3133_p0 }
  0xdc   : > { %2498 = vsyncadd (%p3134_p2), [#allocation12], 4294966272 }
  0xdd   : > { %2500 = dma.done.wait (%p3135_p13), [#allocation15], 512   ;;  %p3136_p4 = pmov %p3133_p0 }
  0xde   : > { %v2895_v0 = vld [vmem:[%s352_s19] sm:$0xff]  ;;  %vm419_vm0 = vcmask 261120   ;;  %v2897_v1 = vld [vmem:[%s352_s19 + $0x8] sm:$0xff]  ;;  %vm701_vm1 = vcmask 64512   ;;  %vm789_vm3 = vcmask 130048   ;;  %s2539_s5 = smov 120  }
  0xdf   : > { %2502 = vsyncadd (%p3136_p4), [#allocation15], 4294966784  ;;  %v446_v2 = vld [vmem:[#allocation11] sm:$0xff]  ;;  %v417_v3 = vmul.f32 %v2895_v0, %v2895_v0  ;;  %v418_v4 = vmul.f32 %v2897_v1, %v2897_v1  ;;  %v447_v5 = vld [vmem:[#allocation11 + $0x8] sm:$0xff]  ;;  %s2540_s14 = smov 112   ;;  %s2541_s21 = smov 104  }
  0xe0   : > { %v2004_v6 = vpack.c.bf16 %v447_v5, %v446_v2  ;;  %v448_v9 = vld [vmem:[#allocation11 + $0x10] sm:$0xff]  ;;  %v449_v10 = vld [vmem:[#allocation11 + $0x18] sm:$0xff]  ;;  %v614_v14 = vld [vmem:[#allocation10] sm:$0xff]  ;;  %s2542_s18 = smov 8   ;;  %s2543_s22 = smov 16   ;;  %vm1525_vm4 = vcmask 195584  }
  0xe1   : > { %v420_v7 = vsel %vm419_vm0, %v417_v3, 0.0  ;;  %v423_v8 = vsel %vm419_vm0, %v418_v4, 0.0  ;;  %v2008_v11 = vpack.c.bf16 %v449_v10, %v448_v9  ;;  %v444_v12 = vld [vmem:[%s361_s3] sm:$0xff]  ;;  %v445_v13 = vld [vmem:[%s361_s3 + $0x8] sm:$0xff]  ;;  %vm2920_vm2 = vmpackc.low %vm701_vm1, %vm701_vm1  ;;  %s2544_s20 = smov 24   ;;  %s412_s23 = scalar_lea.vmem [#allocation16], %s2869_s17 }
  0xe2   : > { %421 = vadd.xlane.f32.xlu0 %v420_v7  ;;  %2005 = vmatprep.subr.bf16.mxu0 %v2004_v6  ;;  %v615_v15 = vld [vmem:[#allocation10 + $0x8] sm:$0xff]  ;;  %v616_v16 = vld [vmem:[#allocation10 + $0x10] sm:$0xff]  ;;  %v617_v18 = vld [vmem:[#allocation10 + $0x18] sm:$0xff]  ;;  %s1637_s4 = sshll.u32 %s412_s23, 4  ;;  %s1847_s10 = sshll.u32 %s2521_s27, 8  ;;  %s3030_s4 = int_to_ptr.vmem [resolvable:$true] %s1637_s4 }
  0xe3   : > { %2007 = vmatpush3.bf16.msra.mxu0 %v2004_v6  ;;  %1912 = vmatprep.mubr.msk.f32.mxu0 %vm419_vm0, %v444_v12  ;;  %v2020_v17 = vpack.c.bf16 %v615_v15, %v614_v14  ;;  %v2024_v19 = vpack.c.bf16 %v617_v18, %v616_v16  ;;  %v533_v20 = vld [vmem:[#allocation13] sm:$0xff]  ;;  %v534_v21 = vld [vmem:[#allocation13 + $0x8] sm:$0xff]  ;;  %v535_v23 = vld [vmem:[#allocation13 + $0x10] sm:$0xff]  ;;  %s3139_s0 = sld [smem:[#allocation30_spill]]  ;;  %s1622_s27 = scalar_lea.sflag [#allocation7], %s2866_s6 }
  0xe4   : > { %2009 = vmatprep.subr.bf16.mxu0 %v2008_v11  ;;  %1923 = vmatprep.mubr.msk.f32.mxu1 %vm419_vm0, %v444_v12  ;;  %v2012_v22 = vpack.c.bf16 %v534_v21, %v533_v20  ;;  %v536_v24 = vld [vmem:[#allocation13 + $0x18] sm:$0xff]  ;;  %v1807_v33 = vld [vmem:[%s3090_s2] ss:$0 sm:$0xff]  ;;  %s2431_s17 = scalar_lea.vmem %s3030_s4, 256  ;;  %s2545_s19 = smov [#allocation16]  }
  0xe5   : > { %v2016_v25 = vpack.c.bf16 %v536_v24, %v535_v23  ;;  %p2432_p1 = scmp.ne.s32.totalorder %s3030_s4, %s2431_s17  ;;  %s2435_s11 = sshll.u32 %s2545_s19, 4  ;;  %s2436_s11 = int_to_ptr.vmem [resolvable:$false] %s2435_s11 }
  0xe6   : > { %424 = vadd.xlane.f32.xlu0 %v423_v8  ;;  %2013 = vmatprep.subr.bf16.mxu1 %v2012_v22  ;;  %s2437_s15 = scalar_lea.vmem %s2436_s11, 512  ;;  %p2438_p3 = scmp.lt.s32.totalorder %s3030_s4, %s2436_s11 }
  0xe7   : > { %2011 = vmatpush3.bf16.msra.mxu0 %v2008_v11  ;;  %2015 = vmatpush3.bf16.msra.mxu1 %v2012_v22  ;;  %p2433_p8 = pnand %p2432_p1, %p2767_p5  ;;  %p2439_p7 = scmp.lt.s32.totalorder %s2437_s15, %s2431_s17 }
  0xe8   : > { %2021 = vmatprep.subr.bf16.mxu0 %v2020_v17  ;;  %2017 = vmatprep.subr.bf16.mxu1 %v2016_v25 }
  0xe9   : > { %s3036_s7 = scalar_lea.hbm %s3139_s0, %s1847_s10  ;;  %p2434_p10 = pneg %p2433_p8 }
  0xea   : > { %1913 = vmatmul.mubr.msk.f32.vlgmr.msra.gmra.mrb[0].mxu0 %vm419_vm0, %v445_v13  ;;  %p2440_p12 = por %p2439_p7, %p2438_p3 }
  0xeb   : > { %2023 = vmatpush3.bf16.msra.mxu0 %v2020_v17  ;;  %2019 = vmatpush3.bf16.msra.mxu1 %v2016_v25 }
  0xec   : > { %2025 = vmatprep.subr.bf16.mxu0 %v2024_v19  ;;  %p2441_p6 = pnand %p2440_p12, %p2434_p10 }
  0xee   : > { %1924 = vmatmul.mubr.msk.f32.vlgmr.msra.gmra.mrb[0].mxu1 %vm419_vm0, %v445_v13 }
  0xef   : > { %2027 = vmatpush3.bf16.msra.mxu0 %v2024_v19 }
 0x16f   : > { %v422_v26 = vpop.xlane.xlu0 %421 }
 0x170   : > { %v427_v27 = vmul.f32 0.03125, %v422_v26 }
 0x172   : > { %v430_v28 = vadd.f32 1e-06, %v427_v27 }
 0x173   : > { %v425_v29 = vpop.xlane.xlu0 %424 }
 0x174   : > { %2223 = vrsqrt.f32 %v430_v28  ;;  %v428_v30 = vmul.f32 0.03125, %v425_v29 }
 0x176   : > { %v431_v31 = vadd.f32 1e-06, %v428_v30 }
 0x178   : > { %2225 = vrsqrt.f32 %v431_v31 }
 0x17e   : > { %v2224_v32 = vpop.eup %2223 }
 0x17f   : > { %v434_v34 = vmul.f32 %v2224_v32, %v2895_v0 }
 0x181   : > { %v442_v35 = vmul.f32 %v1807_v33, %v434_v34 }
 0x182   : > { %v2226_v36 = vpop.eup %2225 }
 0x183   : > { %v435_v37 = vmul.f32 %v2226_v36, %v2897_v1  ;;  %1934 = vmatprep.mubr.msk.f32.mxu0 %vm419_vm0, %v442_v35 }
 0x185   : > { %v443_v38 = vmul.f32 %v1807_v33, %v435_v37 }
 0x187   : > { %1935 = vmatmul.mubr.msk.f32.vlgmr.msra.gmra.mrb[2].mxu0 %vm419_vm0, %v443_v38 }
 0x1bd   : > { %v1914_v39 = vpop.f32.mrb[0].mxu0 }
 0x1be   : > { %532 = vst.msk [vmem:[#allocation2 + $0x8] sm:$0xff] %vm419_vm0, %v1914_v39  ;;  %v522_v40 = vpop.f32.mrb[1].mxu0 }
 0x1bf   : > { %531 = vst.msk [vmem:[#allocation2] sm:$0xff] %vm419_vm0, %v522_v40 }
 0x1c1   : > { %v1925_v46 = vpop.f32.mrb[0].mxu1 }
 0x1c2   : > { %613 = vst.msk [vmem:[#allocation3 + $0x8] sm:$0xff] %vm419_vm0, %v1925_v46  ;;  %v603_v47 = vpop.f32.mrb[1].mxu1 }
 0x1c3   : > { %612 = vst.msk [vmem:[#allocation3] sm:$0xff] %vm419_vm0, %v603_v47 }
 0x1c5   : > { %v700_v41 = vld [vmem:[#allocation2 + $0x8] sm:$0xff] }
 0x1c6   : > { %v699_v42 = vld [vmem:[#allocation2] sm:$0xff] }
 0x1c7   : > { %v2028_v44 = vpack.c.bf16 %v700_v41, %v699_v42  ;;  %v2924_v45 = vpack.i.bf16 %v700_v41, %v699_v42 }
 0x1c9   : > { %2030 = vmatprep.subr.msk.bf16.mxu1 %vm2920_vm2, %v2028_v44  ;;  %v813_v51 = vld [vmem:[#allocation3 + $0x8] sm:$0xff] }
 0x1ca   : > { %2033 = vmatpush3.bf16.xpose.msk.msra.mxu1 %vm2920_vm2, %v2028_v44  ;;  %v812_v50 = vld [vmem:[#allocation3] sm:$0xff] }
 0x1cb   : > { %v2034_v52 = vpack.c.bf16 %v813_v51, %v812_v50  ;;  %v2940_v53 = vpack.i.bf16 %v813_v51, %v812_v50 }
 0x1cd   : > { %2035 = vmatprep.subr.bf16.mxu1 %v2034_v52 }
 0x25a   : > { %v2932_v48 = vpop.f32.mrb[2].mxu0 }
 0x25b   : > { %v2934_v49 = vpop.f32.mrb[3].mxu0 }
 0x25c   : > { %1941 = vmatprep.mubr.msk.f32.mxu1 %vm701_vm1, %v2934_v49 }
 0x25d   : > { %1942 = vmatmul.mubr.msk.f32.vlgmr.msra.gmra.mrb[2].mxu1 %vm701_vm1, %v2932_v48 }
 0x25e   : > { %2037 = vmatpush3.bf16.msra.mxu1 %v2034_v52 }
 0x330   : > { %v1943_v54 = vpop.f32.mrb[2].mxu1 }
 0x331   : > { %v780_v55 = vpop.f32.mrb[3].mxu1  ;;  %v793_v57 = vsel %vm789_vm3, %v1943_v54, -inf }
 0x332   : > { %v790_v56 = vsel %vm789_vm3, %v780_v55, -inf }
 0x333   : > { %791 = vmax.xlane.f32.xlu1 %v790_v56 }
 0x337   : > { %794 = vmax.xlane.f32.xlu1 %v793_v57 }
 0x3c0   : > { %v792_v58 = vpop.xlane.xlu1 %791 }
 0x3c1   : > { %v796_v59 = vsub.f32 %v780_v55, %v792_v58 }
 0x3c3   : > { %v798_v60 = vmul.f32 1.442695, %v796_v59 }
 0x3c4   : > { %v795_v61 = vpop.xlane.xlu1 %794 }
 0x3c5   : > { %2227 = vpow2.f32 %v798_v60  ;;  %v797_v62 = vsub.f32 %v1943_v54, %v795_v61 }
 0x3c7   : > { %v800_v63 = vmul.f32 1.442695, %v797_v62 }
 0x3c9   : > { %2229 = vpow2.f32 %v800_v63 }
 0x3cf   : > { %v2228_v2 = vpop.eup %2227 }
 0x3d0   : > { %v802_v3 = vsel %vm789_vm3, %v2228_v2, 0.0 }
 0x3d1   : > { %803 = vadd.xlane.f32.xlu0 %v802_v3 }
 0x3d3   : > { %v2230_v4 = vpop.eup %2229 }
 0x3d4   : > { %v805_v5 = vsel %vm789_vm3, %v2230_v4, 0.0 }
 0x3d5   : > { %806 = vadd.xlane.f32.xlu1 %v805_v5 }
 0x3e6   : > { %895 = vrot.lane.b32.xlu1 %v2934_v49, %s2539_s5 }
 0x3e7   : > { %2194 = vrot.lane.b32.xlu0 %v2924_v45, %s2539_s5 }
 0x3ea   : > { %897 = vrot.lane.b32.xlu1 %v2932_v48, %s2539_s5 }
 0x45e   : > { %v804_v6 = vpop.xlane.xlu0 %803 }
 0x45f   : > { %2231 = vrcp.f32 %v804_v6 }
 0x462   : > { %v2195_v7 = vpop.permute.xlu0 %2194  ;;  %v807_v8 = vpop.xlane.xlu1 %806 }
 0x463   : > { %v2197_v9 = vunpack.i.h.bf16 %v2195_v7  ;;  %v2196_v10 = vunpack.i.l.bf16 %v2195_v7  ;;  %2233 = vrcp.f32 %v807_v8 }
 0x465   : > { %v2038_v11 = vpack.c.bf16 %v2197_v9, %v2196_v10 }
 0x466   : > { %v896_v16 = vpop.permute.xlu1 %895 }
 0x467   : > { %2040 = vmatprep.subr.msk.bf16.mxu1 %vm2920_vm2, %v2038_v11 }
 0x469   : > { %v2232_v12 = vpop.eup %2231 }
 0x46a   : > { %v810_v13 = vmul.f32 %v2232_v12, %v2228_v2  ;;  %v898_v17 = vpop.permute.xlu1 %897 }
 0x46c   : > { %1948 = vmatprep.mubr.msk.f32.mxu1 %vm789_vm3, %v810_v13 }
 0x46d   : > { %v2234_v14 = vpop.eup %2233 }
 0x46e   : > { %v811_v15 = vmul.f32 %v2234_v14, %v2230_v4 }
 0x470   : > { %1949 = vmatmul.mubr.msk.f32.vlgmr.msra.gmra.mrb[4].mxu1 %vm789_vm3, %v811_v15 }
 0x471   : > { %2043 = vmatpush3.bf16.xpose.msk.msra.mxu1 %vm2920_vm2, %v2038_v11  ;;  %1955 = vmatprep.mubr.msk.f32.mxu1 %vm701_vm1, %v896_v16 }
 0x478   : > { %1956 = vmatmul.mubr.msk.f32.vlgmr.msra.gmra.mrb[6].mxu1 %vm701_vm1, %v898_v17 }
 0x543   : > { %v2960_v18 = vpop.f32.mrb[4].mxu1 }
 0x544   : > { %v2962_v19 = vpop.f32.mrb[5].mxu1 }
 0x54b   : > { %v1957_v20 = vpop.f32.mrb[6].mxu1 }
 0x54c   : > { %v977_v21 = vpop.f32.mrb[7].mxu1  ;;  %v989_v22 = vsel %vm789_vm3, %v1957_v20, -inf }
 0x54d   : > { %990 = vmax.xlane.f32.xlu0 %v989_v22  ;;  %v986_v23 = vsel %vm789_vm3, %v977_v21, -inf }
 0x54e   : > { %987 = vmax.xlane.f32.xlu1 %v986_v23 }
 0x55f   : > { %2199 = vrot.lane.b32.xlu1 %v2940_v53, %s2539_s5 }
 0x563   : > { %1097 = vrot.lane.b32.xlu1 %v2934_v49, %s2540_s14 }
 0x567   : > { %1099 = vrot.lane.b32.xlu1 %v2932_v48, %s2540_s14 }
 0x5da   : > { %v991_v24 = vpop.xlane.xlu0 %990 }
 0x5db   : > { %v993_v25 = vsub.f32 %v1957_v20, %v991_v24  ;;  %v988_v26 = vpop.xlane.xlu1 %987 }
 0x5dc   : > { %v992_v27 = vsub.f32 %v977_v21, %v988_v26 }
 0x5dd   : > { %v996_v28 = vmul.f32 1.442695, %v993_v25 }
 0x5de   : > { %v994_v29 = vmul.f32 1.442695, %v992_v27 }
 0x5df   : > { %2235 = vpow2.f32 %v996_v28  ;;  %v2200_v30 = vpop.permute.xlu1 %2199 }
 0x5e0   : > { %v2202_v31 = vunpack.i.h.bf16 %v2200_v30  ;;  %v2201_v32 = vunpack.i.l.bf16 %v2200_v30  ;;  %2237 = vpow2.f32 %v994_v29 }
 0x5e2   : > { %v2044_v33 = vpack.c.bf16 %v2202_v31, %v2201_v32 }
 0x5e3   : > { %v1098_v52 = vpop.permute.xlu1 %1097 }
 0x5e4   : > { %2045 = vmatprep.subr.bf16.mxu0 %v2044_v33 }
 0x5e5   : > { %2047 = vmatpush3.bf16.msra.mxu0 %v2044_v33 }
 0x5e7   : > { %v1100_v54 = vpop.permute.xlu1 %1099 }
 0x5e9   : > { %v2236_v34 = vpop.eup %2235 }
 0x5ea   : > { %v1001_v35 = vsel %vm789_vm3, %v2236_v34, 0.0  ;;  %v2238_v36 = vpop.eup %2237 }
 0x5eb   : > { %1002 = vadd.xlane.f32.xlu0 %v1001_v35  ;;  %v998_v37 = vsel %vm789_vm3, %v2238_v36, 0.0 }
 0x5ef   : > { %999 = vadd.xlane.f32.xlu0 %v998_v37 }
 0x605   : > { %2204 = vrot.lane.b32.xlu0 %v2924_v45, %s2540_s14 }
 0x678   : > { %v1003_v38 = vpop.xlane.xlu0 %1002 }
 0x679   : > { %2239 = vrcp.f32 %v1003_v38 }
 0x67c   : > { %v1000_v39 = vpop.xlane.xlu0 %999 }
 0x67d   : > { %2241 = vrcp.f32 %v1000_v39 }
 0x680   : > { %v2205_v40 = vpop.permute.xlu0 %2204 }
 0x681   : > { %v2207_v41 = vunpack.i.h.bf16 %v2205_v40  ;;  %v2206_v42 = vunpack.i.l.bf16 %v2205_v40 }
 0x683   : > { %v2048_v44 = vpack.c.bf16 %v2207_v41, %v2206_v42  ;;  %v2240_v46 = vpop.eup %2239 }
 0x684   : > { %v1007_v51 = vmul.f32 %v2240_v46, %v2236_v34 }
 0x685   : > { %2050 = vmatprep.subr.msk.bf16.mxu0 %vm2920_vm2, %v2048_v44 }
 0x687   : > { %v2242_v47 = vpop.eup %2241 }
 0x688   : > { %v1006_v50 = vmul.f32 %v2242_v47, %v2238_v36 }
 0x68a   : > { %1962 = vmatprep.mubr.msk.f32.mxu0 %vm789_vm3, %v1006_v50 }
 0x68b   : > { %1963 = vmatmul.mubr.msk.f32.vlgmr.msra.gmra.mrb[4].mxu0 %vm789_vm3, %v1007_v51 }
 0x68c   : > { %2053 = vmatpush3.bf16.xpose.msk.msra.mxu0 %vm2920_vm2, %v2048_v44  ;;  %1969 = vmatprep.mubr.msk.f32.mxu0 %vm701_vm1, %v1098_v52  ;;  %v1532_v52 = vld [vmem:[#allocation14] sm:$0xff] }
 0x693   : > { %1970 = vmatmul.mubr.msk.f32.vlgmr.msra.gmra.mrb[6].mxu0 %vm701_vm1, %v1100_v54  ;;  %v1533_v54 = vld [vmem:[#allocation14 + $0x8] sm:$0xff] }
 0x75e   : > { %v1964_v55 = vpop.f32.mrb[4].mxu0 }
 0x75f   : > { %v2984_v56 = vpop.f32.mrb[5].mxu0 }
 0x766   : > { %v1971_v57 = vpop.f32.mrb[6].mxu0 }
 0x767   : > { %v1179_v58 = vpop.f32.mrb[7].mxu0  ;;  %v1191_v59 = vsel %vm789_vm3, %v1971_v57, -inf }
 0x768   : > { %1192 = vmax.xlane.f32.xlu0 %v1191_v59  ;;  %v1188_v60 = vsel %vm789_vm3, %v1179_v58, -inf }
 0x769   : > { %1189 = vmax.xlane.f32.xlu1 %v1188_v60 }
 0x77a   : > { %2209 = vrot.lane.b32.xlu1 %v2940_v53, %s2540_s14 }
 0x77e   : > { %1297 = vrot.lane.b32.xlu1 %v2934_v49, %s2541_s21 }
 0x782   : > { %1299 = vrot.lane.b32.xlu1 %v2932_v48, %s2541_s21 }
 0x7f5   : > { %v1193_v61 = vpop.xlane.xlu0 %1192 }
 0x7f6   : > { %v1195_v62 = vsub.f32 %v1971_v57, %v1193_v61  ;;  %v1190_v63 = vpop.xlane.xlu1 %1189  ;;  %v1534_v57 = vld [vmem:[#allocation14 + $0x10] sm:$0xff] }
 0x7f7   : > { %v1194_v2 = vsub.f32 %v1179_v58, %v1190_v63  ;;  %v1535_v58 = vld [vmem:[#allocation14 + $0x18] sm:$0xff] }
 0x7f8   : > { %v1198_v3 = vmul.f32 1.442695, %v1195_v62  ;;  %v2072_v59 = vpack.c.bf16 %v1535_v58, %v1534_v57 }
 0x7f9   : > { %v1196_v4 = vmul.f32 1.442695, %v1194_v2 }
 0x7fa   : > { %2243 = vpow2.f32 %v1198_v3  ;;  %v2210_v5 = vpop.permute.xlu1 %2209 }
 0x7fb   : > { %v2212_v6 = vunpack.i.h.bf16 %v2210_v5  ;;  %v2211_v7 = vunpack.i.l.bf16 %v2210_v5  ;;  %2245 = vpow2.f32 %v1196_v4 }
 0x7fd   : > { %v2054_v8 = vpack.c.bf16 %v2212_v6, %v2211_v7 }
 0x7fe   : > { %v1298_v23 = vpop.permute.xlu1 %1297 }
 0x7ff   : > { %2055 = vmatprep.subr.bf16.mxu1 %v2054_v8 }
 0x800   : > { %2057 = vmatpush3.bf16.msra.mxu1 %v2054_v8 }
 0x804   : > { %v2244_v9 = vpop.eup %2243 }
 0x805   : > { %v1203_v49 = vsel %vm789_vm3, %v2244_v9, 0.0  ;;  %v2246_v10 = vpop.eup %2245 }
 0x806   : > { %1204 = vadd.xlane.f32.xlu0 %v1203_v49  ;;  %v1200_v48 = vsel %vm789_vm3, %v2246_v10, 0.0 }
 0x80a   : > { %1201 = vadd.xlane.f32.xlu0 %v1200_v48 }
 0x820   : > { %2214 = vrot.lane.b32.xlu0 %v2924_v45, %s2541_s21  ;;  %v1300_v45 = vpop.permute.xlu1 %1299 }
 0x893   : > { %v1205_v11 = vpop.xlane.xlu0 %1204 }
 0x894   : > { %2247 = vrcp.f32 %v1205_v11 }
 0x897   : > { %v1202_v12 = vpop.xlane.xlu0 %1201 }
 0x898   : > { %2249 = vrcp.f32 %v1202_v12 }
 0x89b   : > { %v2215_v13 = vpop.permute.xlu0 %2214 }
 0x89c   : > { %v2217_v14 = vunpack.i.h.bf16 %v2215_v13  ;;  %v2216_v15 = vunpack.i.l.bf16 %v2215_v13 }
 0x89e   : > { %v2058_v16 = vpack.c.bf16 %v2217_v14, %v2216_v15  ;;  %v2248_v17 = vpop.eup %2247 }
 0x89f   : > { %v1209_v22 = vmul.f32 %v2248_v17, %v2244_v9 }
 0x8a0   : > { %2060 = vmatprep.subr.msk.bf16.mxu1 %vm2920_vm2, %v2058_v16 }
 0x8a2   : > { %v2250_v20 = vpop.eup %2249 }
 0x8a3   : > { %v1208_v21 = vmul.f32 %v2250_v20, %v2246_v10 }
 0x8a5   : > { %1976 = vmatprep.mubr.msk.f32.mxu1 %vm789_vm3, %v1208_v21 }
 0x8a6   : > { %1977 = vmatmul.mubr.msk.f32.vlgmr.msra.gmra.mrb[8].mxu1 %vm789_vm3, %v1209_v22 }
 0x8a7   : > { %2063 = vmatpush3.bf16.xpose.msk.msra.mxu1 %vm2920_vm2, %v2058_v16  ;;  %1983 = vmatprep.mubr.msk.f32.mxu1 %vm701_vm1, %v1298_v23 }
 0x8ae   : > { %1984 = vmatmul.mubr.msk.f32.vlgmr.msra.gmra.mrb[10].mxu1 %vm701_vm1, %v1300_v45 }
 0x979   : > { %v1978_v24 = vpop.f32.mrb[8].mxu1 }
 0x97a   : > { %v1288_v25 = vpop.f32.mrb[9].mxu1 }
 0x981   : > { %v1985_v26 = vpop.f32.mrb[10].mxu1 }
 0x982   : > { %v1379_v27 = vpop.f32.mrb[11].mxu1  ;;  %v1391_v28 = vsel %vm789_vm3, %v1985_v26, -inf }
 0x983   : > { %1392 = vmax.xlane.f32.xlu0 %v1391_v28  ;;  %v1388_v29 = vsel %vm789_vm3, %v1379_v27, -inf }
 0x984   : > { %1389 = vmax.xlane.f32.xlu1 %v1388_v29 }
 0x995   : > { %2219 = vrot.lane.b32.xlu1 %v2940_v53, %s2541_s21 }
 0x999   : > { %1501 = vrot.lane.b32.xlu1 %v1964_v55, %s2542_s18  ;;  %v2068_v55 = vpack.c.bf16 %v1533_v54, %v1532_v52 }
 0x99d   : > { %1507 = vrot.lane.b32.xlu1 %v1288_v25, %s2543_s22 }
 0x9a1   : > { %1509 = vrot.lane.b32.xlu1 %v1978_v24, %s2543_s22 }
 0xa10   : > { %v1393_v43 = vpop.xlane.xlu0 %1392 }
 0xa11   : > { %v1395_v30 = vsub.f32 %v1985_v26, %v1393_v43  ;;  %v1390_v31 = vpop.xlane.xlu1 %1389 }
 0xa12   : > { %v1394_v32 = vsub.f32 %v1379_v27, %v1390_v31 }
 0xa13   : > { %v1398_v33 = vmul.f32 1.442695, %v1395_v30 }
 0xa14   : > { %v1396_v34 = vmul.f32 1.442695, %v1394_v32 }
 0xa15   : > { %v2220_v35 = vpop.permute.xlu1 %2219 }
 0xa16   : > { %2251 = vpow2.f32 %v1396_v34  ;;  %v2222_v36 = vunpack.i.h.bf16 %v2220_v35  ;;  %v2221_v37 = vunpack.i.l.bf16 %v2220_v35 }
 0xa17   : > { %2253 = vpow2.f32 %v1398_v33 }
 0xa18   : > { %v2064_v38 = vpack.c.bf16 %v2222_v36, %v2221_v37 }
 0xa19   : > { %v1502_v61 = vpop.permute.xlu1 %1501 }
 0xa1a   : > { %2065 = vmatprep.subr.bf16.mxu0 %v2064_v38  ;;  %v1522_v4 = vsel %vm701_vm1, %v2960_v18, %v1502_v61 }
 0xa1b   : > { %2067 = vmatpush3.bf16.msra.mxu0 %v2064_v38 }
 0xa1c   : > { %2069 = vmatprep.subr.bf16.mxu0 %v2068_v55 }
 0xa1d   : > { %v1508_v62 = vpop.permute.xlu1 %1507 }
 0xa20   : > { %v2252_v53 = vpop.eup %2251 }
 0xa21   : > { %v1400_v39 = vsel %vm789_vm3, %v2252_v53, 0.0  ;;  %v2254_v40 = vpop.eup %2253  ;;  %v1510_v2 = vpop.permute.xlu1 %1509 }
 0xa22   : > { %1401 = vadd.xlane.f32.xlu0 %v1400_v39  ;;  %v1403_v41 = vsel %vm789_vm3, %v2254_v40, 0.0  ;;  %v1524_v5 = vsel %vm789_vm3, %v1522_v4, %v1510_v2 }
 0xa26   : > { %1404 = vadd.xlane.f32.xlu0 %v1403_v41 }
 0xa3c   : > { %1499 = vrot.lane.b32.xlu0 %v2984_v56, %s2542_s18 }
 0xaaf   : > { %v1402_v42 = vpop.xlane.xlu0 %1401 }
 0xab0   : > { %2255 = vrcp.f32 %v1402_v42 }
 0xab3   : > { %v1405_v44 = vpop.xlane.xlu0 %1404 }
 0xab4   : > { %2257 = vrcp.f32 %v1405_v44 }
 0xab7   : > { %v1500_v63 = vpop.permute.xlu0 %1499 }
 0xab8   : > { %v1521_v3 = vsel %vm701_vm1, %v2962_v19, %v1500_v63 }
 0xab9   : > { %v1523_v8 = vsel %vm789_vm3, %v1521_v3, %v1508_v62 }
 0xaba   : > { %v2256_v46 = vpop.eup %2255 }
 0xabb   : > { %v1408_v47 = vmul.f32 %v2256_v46, %v2252_v53 }
 0xabd   : > { %1990 = vmatprep.mubr.msk.f32.mxu0 %vm789_vm3, %v1408_v47 }
 0xabe   : > { %v2258_v50 = vpop.eup %2257 }
 0xabf   : > { %v1409_v51 = vmul.f32 %v2258_v50, %v2254_v40 }
 0xac1   : > { %1991 = vmatmul.mubr.msk.f32.vlgmr.msra.gmra.mrb[8].mxu0 %vm789_vm3, %v1409_v51 }
 0xac2   : > { %2071 = vmatpush3.bf16.msra.mxu0 %v2068_v55 }
 0xac3   : > { %2073 = vmatprep.subr.bf16.mxu0 %v2072_v59 }
 0xac6   : > { %2075 = vmatpush3.bf16.msra.mxu0 %v2072_v59 }
 0xb94   : > { %v1992_v56 = vpop.f32.mrb[8].mxu0 }
 0xb95   : > { %1517 = vrot.lane.b32.xlu1 %v1992_v56, %s2544_s20  ;;  %v1488_v60 = vpop.f32.mrb[9].mxu0 }
 0xb96   : > { %1515 = vrot.lane.b32.xlu0 %v1488_v60, %s2544_s20 }
 0xc07   : > { %v1518_v6 = vpop.permute.xlu1 %1517 }
 0xc08   : > { %v1527_v7 = vsel %vm1525_vm4, %v1524_v5, %v1518_v6  ;;  %v1516_v9 = vpop.permute.xlu0 %1515 }
 0xc09   : > { %1529 = vst.msk [vmem:[#allocation4 + $0x8] sm:$0xff] %vm419_vm0, %v1527_v7  ;;  %v1526_v49 = vsel %vm1525_vm4, %v1523_v8, %v1516_v9 }
 0xc0a   : > { %1528 = vst.msk [vmem:[#allocation4] sm:$0xff] %vm419_vm0, %v1526_v49 }
 0xc10   : > { %v1531_v19 = vld [vmem:[#allocation4 + $0x8] sm:$0xff] }
 0xc11   : > { %v1530_v10 = vld [vmem:[#allocation4] sm:$0xff] }
 0xc12   : > { %2001 = vmatprep.mubr.msk.f32.mxu0 %vm419_vm0, %v1530_v10 }
 0xc13   : > { %2002 = vmatmul.mubr.msk.f32.vlgmr.msra.gmra.mrb[10].mxu0 %vm419_vm0, %v1531_v19 }
 0xce6   : > { %v2003_v18 = vpop.f32.mrb[10].mxu0 }
 0xce7   : > { %v1618_v48 = vadd.f32 %v2003_v18, %v2897_v1  ;;  %v1608_v11 = vpop.f32.mrb[11].mxu0 }
 0xce8   : > { %v1617_v12 = vadd.f32 %v1608_v11, %v2895_v0 }
 0xce9   : > { %1620 = vst.msk [vmem:[%s412_s23 + $0x8] sm:$0xff] %vm419_vm0, %v1618_v48 }
 0xcea   : > { %1619 = vst.msk [vmem:[%s412_s23] sm:$0xff] %vm419_vm0, %v1617_v12 }
 0xceb   : > { %2444 = shalt.err (!%p2441_p6)
}
 0xcec   : > { %s2445_s3 = scalar_lea.hbm %s3036_s7, 256  ;;  %s2449_s5 = scalar_lea.hbm %s3139_s0, 512 }
 0xced   : > { %p2446_p11 = scmp.ne.s32.totalorder %s3036_s7, %s2445_s3  ;;  %p2450_p2 = scmp.lt.u32.totalorder %s3036_s7, %s3139_s0 }
 0xcee   : > { %p2451_p13 = scmp.lt.u32.totalorder %s2449_s5, %s2445_s3  ;;  %p2453_p1 = scmp.lt.u32.totalorder %s2445_s3, %s3036_s7 }
 0xcef   : > { %p2447_p9 = pnand %p2446_p11, %p2767_p5 }
 0xcf0   : > { %p2452_p4 = por %p2451_p13, %p2450_p2 }
 0xcf1   : > { %p2448_p0 = pneg %p2447_p9 }
 0xcf2   : > { %p2454_p8 = por %p2453_p1, %p2452_p4 }
 0xcf4   : > { %p2455_p10 = pnand %p2454_p8, %p2448_p0 }
 0xcf6   : > { %2458 = shalt.err (!%p2455_p10)
}
 0xcf7   : > { %s2546_s22 = smov 128  }
 0xcf8   : > { %2096 = dma.vmem_to_hbm [thread:$0]  (%p2767_p5), %s3030_s4, 256, %s3036_s7, %s1622_s27, %s2546_s22, %s2546_s22, %s2542_s18  }
 0xcf9 PF: > { %s3140_s20 = sld [smem:[#allocation23_spill]]  ;;  %s3141_s23 = sld [smem:[#allocation24_spill]] }
 0xcfa   : > { %p3143_p7 = scmp.ge.s32.totalorder %s2529_s29, 2 }
 0xcff   : > { %s1652_s10 = sand.u32 1, %s3140_s20   ;;  %p3142_p3 = scmp.ne.s32.totalorder %s3141_s23, 0 }
 0xd00   : > { %s1653_s13 = scalar_lea.sflag [#allocation7], %s1652_s10 }
 0xd01   : > { %p2119_p12 = pnand %p3143_p7, %p3142_p3 }
 0xd03   : > { %2504 = dma.done.wait (!%p2119_p12), %s1653_s13, 256  }
 0xd04   : > { %2506 = vsyncadd (!%p2119_p12), %s1653_s13, 4294967040  ;;  %s28_s29 = sadd.s32 1, %s2529_s29   ;;  %s3144_s24 = smov %s2513_s25 }
 0xd05   : > { %p25_p6 = scmp.ge.s32.totalorder %s28_s29, 4   ;;  %s3145_s25 = smov %s2517_s26 }
 0xd06   : > { %s3146_s26 = smov %s2778_s12  ;;  %s3147_s27 = smov %s2525_s28 }
 0xd07   : > { %s3148_s28 = smov %s3150_s8  ;;  %27 = sbr.rel (!%p25_p6) target bundleno = 17 (0x11), region = 122 }
 0xd0e   :  { %1658 = vsyncpa [#allocation6], 1 }
 0xd0f   :  { %1660 = vsyncpa [#allocation6 + $0x1], 1 }
 0xd10   :  { %1661 = vsyncpa [#allocation9], 1 }
 0xd11   :  { %1663 = vsyncpa [#allocation9 + $0x1], 1 }
 0xd12   :  { %1664 = vsyncpa [#allocation12], 1 }
 0xd13   :  { %1665 = vsyncpa [#allocation15], 1 }
 0xd14   :  { %1666 = vsyncpa [#allocation7], 1 }
 0xd15   :  { %1668 = vsyncpa [#allocation7 + $0x1], 1 }

</bundles_post_ra>
